<compile_context>
chip_gen: v7x
topology: tpu7x:2x2x1
jax: 0.10.0
libtpu: 0.0.40
codegen_flags: <defaults>
</compile_context>

<pallas_src>
import functools

import jax
import jax.numpy as jnp
from jax.experimental import pallas as pl
from jax.experimental.pallas import tpu as pltpu


def encoder_block_kernel(x_ref, wqkv_ref, wout_ref,
                         g1_ref, be1_ref, w1_ref, b1_ref, w2_ref, b2_ref,
                         g2_ref, be2_ref, o_ref, *,
                         b_blk, seq, num_heads, d_k, d_v, eps):
    x = x_ref[...]                                   # (b_blk*seq, D)
    xf = x.astype(jnp.float32)
    D = x.shape[-1]

    # ---- fused lane-dense QKV projection (all heads, one matmul) ----
    qkv = jnp.dot(x, wqkv_ref[...], preferred_element_type=jnp.float32)
    hk = num_heads * d_k
    hv = num_heads * d_v
    q = qkv[:, :hk].reshape(b_blk, seq, hk)          # scale folded into wq
    k = qkv[:, hk:2 * hk].reshape(b_blk, seq, hk)
    v = qkv[:, 2 * hk:].reshape(b_blk, seq, hv)

    wout = wout_ref[...]                             # (H*d_v, D)

    # ---- per-head attention; accumulate directly into the w_out projection
    #      (no concatenate of narrow head slabs) ----
    att_out = jnp.zeros((b_blk * seq, D), jnp.float32)
    for h in range(num_heads):                       # static unroll, H small
        qh = q[:, :, h * d_k:(h + 1) * d_k]
        kh = k[:, :, h * d_k:(h + 1) * d_k]
        vh = v[:, :, h * d_v:(h + 1) * d_v]
        scores = jnp.einsum('bqd,bkd->bqk', qh, kh,
                            preferred_element_type=jnp.float32)
        # torch.softmax(scores, dim=-2): normalize over the *query* axis.
        m = jnp.max(scores, axis=-2, keepdims=True)
        e = jnp.exp(scores - m)
        attn = e * pl.reciprocal(jnp.sum(e, axis=-2, keepdims=True))
        head = jnp.einsum('bqk,bkd->bqd', attn.astype(vh.dtype), vh,
                          preferred_element_type=jnp.float32)
        head2 = head.reshape(b_blk * seq, d_v)
        att_out = att_out + jnp.dot(
            head2.astype(wout.dtype), wout[h * d_v:(h + 1) * d_v, :],
            preferred_element_type=jnp.float32)

    # ---- residual + LayerNorm 1 (f32 statistics) ----
    h1 = xf + att_out
    mu1 = jnp.mean(h1, axis=-1, keepdims=True)
    var1 = jnp.mean((h1 - mu1) ** 2, axis=-1, keepdims=True)
    h1n = (h1 - mu1) * jax.lax.rsqrt(var1 + eps) * g1_ref[...] + be1_ref[...]

    # ---- feed-forward: Linear -> ReLU -> Linear ----
    f = jnp.dot(h1n.astype(w1_ref.dtype), w1_ref[...],
                preferred_element_type=jnp.float32) + b1_ref[...]
    f = jnp.maximum(f, 0.0)
    f = jnp.dot(f.astype(w2_ref.dtype), w2_ref[...],
                preferred_element_type=jnp.float32) + b2_ref[...]

    # ---- residual + LayerNorm 2 (f32 statistics) ----
    h2 = h1n + f
    mu2 = jnp.mean(h2, axis=-1, keepdims=True)
    var2 = jnp.mean((h2 - mu2) ** 2, axis=-1, keepdims=True)
    o_ref[...] = ((h2 - mu2) * jax.lax.rsqrt(var2 + eps)
                  * g2_ref[...] + be2_ref[...]).astype(o_ref.dtype)


def transformer_encoder_block(x, p, *, eps=1e-5, block_b=None,
                              matmul_dtype=jnp.float32):
    """x: (B, S, D); params in PyTorch layout (wq/wk/wv: (H, D, d_k))."""
    B, S, D = x.shape
    H, _, d_k = p["wq"].shape
    d_v = p["wv"].shape[-1]

    if block_b is None:
        # Largest divisor of B that is <= 8: fill vreg sublanes / MXU M dim
        # while keeping the grid evenly divided.
        block_b = max(d for d in range(1, min(B, 8) + 1) if B % d == 0)
    n_blk = B // block_b

    # ---- lane-dense 2-D weight layouts built once in the wrapper ----
    scale = 1.0 / (d_k ** 0.5)
    wq2 = jnp.transpose(p["wq"], (1, 0, 2)).reshape(D, H * d_k) * scale
    wk2 = jnp.transpose(p["wk"], (1, 0, 2)).reshape(D, H * d_k)
    wv2 = jnp.transpose(p["wv"], (1, 0, 2)).reshape(D, H * d_v)
    wqkv = jnp.concatenate([wq2, wk2, wv2], axis=-1).astype(matmul_dtype)

    weights = (wqkv,
               p["wout"].astype(matmul_dtype),
               p["g1"], p["be1"],
               p["w1"].astype(matmul_dtype), p["b1"],
               p["w2"].astype(matmul_dtype), p["b2"],
               p["g2"], p["be2"])

    # Flatten (B, S, D) -> (B*S, D): free in HBM, gives the kernel a tall
    # row-blocked slab so every matmul / LayerNorm has a real M dimension.
    x2 = x.reshape(B * S, D)
    if matmul_dtype != jnp.float32:
        x2 = x2.astype(matmul_dtype)

    kernel = functools.partial(
        encoder_block_kernel, b_blk=block_b, seq=S,
        num_heads=H, d_k=d_k, d_v=d_v, eps=eps)

    def wspec(a):
        n = a.ndim
        return pl.BlockSpec(a.shape, lambda i: (0,) * n)

    out2 = pl.pallas_call(
        kernel,
        out_shape=jax.ShapeDtypeStruct((B * S, D), jnp.float32),
        grid=(n_blk,),
        in_specs=[pl.BlockSpec((block_b * S, D), lambda i: (i, 0))]
                 + [wspec(a) for a in weights],
        out_specs=pl.BlockSpec((block_b * S, D), lambda i: (i, 0)),
        compiler_params=pltpu.CompilerParams(
            dimension_semantics=("parallel",)),
    )(x2, *weights)

    return out2.reshape(B, S, D)


def reference(x, p, eps=1e-5):
    """Pure-JAX reference matching the PyTorch forward exactly."""
    H, _, d_k = p["wq"].shape
    outs = []
    for h in range(H):
        q = x @ p["wq"][h]
        k = x @ p["wk"][h]
        v = x @ p["wv"][h]
        scores = jnp.einsum("bqe,bse->bqs", q, k) / (d_k ** 0.5)
        attn = jax.nn.softmax(scores, axis=-2)
        outs.append(jnp.einsum("bqs,bsv->bqv", attn, v))
    att = jnp.concatenate(outs, axis=-1) @ p["wout"]

    def ln(z, g, b):
        mu = z.mean(-1, keepdims=True)
        var = ((z - mu) ** 2).mean(-1, keepdims=True)
        return (z - mu) / jnp.sqrt(var + eps) * g + b

    h1 = ln(x + att, p["g1"], p["be1"])
    f = jnp.maximum(h1 @ p["w1"] + p["b1"], 0.0) @ p["w2"] + p["b2"]
    return ln(h1 + f, p["g2"], p["be2"])


def make_params(key, d_model, num_heads, d_k, d_v, d_ff):
    ks = jax.random.split(key, 9)
    p = {
        # per-head attention projection weights, stacked over heads
        "wq": jax.random.normal(ks[0], (num_heads, d_model, d_k), jnp.float32) * 0.1,
        "wk": jax.random.normal(ks[1], (num_heads, d_model, d_k), jnp.float32) * 0.1,
        "wv": jax.random.normal(ks[2], (num_heads, d_model, d_v), jnp.float32) * 0.1,
        "wout": jax.random.normal(ks[3], (num_heads * d_v, d_model), jnp.float32) * 0.1,
        # LayerNorm 1 (PyTorch default init: gamma=1, beta=0)
        "g1": jnp.ones((1, d_model), jnp.float32),
        "be1": jnp.zeros((1, d_model), jnp.float32),
        # FF: fc1 (d_model -> d_ff), fc2 (d_ff -> d_model); stored as x @ W + b
        "w1": jax.random.normal(ks[4], (d_model, d_ff), jnp.float32) * 0.1,
        "b1": jax.random.normal(ks[5], (1, d_ff), jnp.float32) * 0.1,
        "w2": jax.random.normal(ks[6], (d_ff, d_model), jnp.float32) * 0.1,
        "b2": jax.random.normal(ks[7], (1, d_model), jnp.float32) * 0.1,
        # LayerNorm 2
        "g2": jnp.ones((1, d_model), jnp.float32),
        "be2": jnp.zeros((1, d_model), jnp.float32),
    }
    return p


if __name__ == "__main__":
    B, S, d_model = 2, 8, 32
    num_heads = 4
    d_k = d_v = d_model // num_heads          # 8
    d_ff = 64

    key = jax.random.PRNGKey(0)
    kx, kp = jax.random.split(key)
    x = jax.random.normal(kx, (B, S, d_model), jnp.float32)
    params = make_params(kp, d_model, num_heads, d_k, d_v, d_ff)

    # f32 matmuls by default; pass matmul_dtype=jnp.bfloat16 on v6e/v7x when
    # a looser tolerance is acceptable.
    out = transformer_encoder_block(x, params)
    out = jax.block_until_ready(out)

    ref = reference(x, params)
    assert out.shape == (B, S, d_model)
    assert jnp.allclose(out, ref, rtol=1e-4, atol=1e-4), (
        f"max abs err {jnp.max(jnp.abs(out - ref))}")

    print("KERNEL_OK")
</pallas_src>

<mosaic_0001>
module attributes {stable_mosaic.version = 11 : i64} {
  func.func @encoder_block_kernel(%arg0: i32, %arg1: memref<16x32xf32, #tpu.memory_space<vmem>>, %arg2: memref<32x96xf32, #tpu.memory_space<vmem>>, %arg3: memref<32x32xf32, #tpu.memory_space<vmem>>, %arg4: memref<1x32xf32, #tpu.memory_space<vmem>>, %arg5: memref<1x32xf32, #tpu.memory_space<vmem>>, %arg6: memref<32x64xf32, #tpu.memory_space<vmem>>, %arg7: memref<1x64xf32, #tpu.memory_space<vmem>>, %arg8: memref<64x32xf32, #tpu.memory_space<vmem>>, %arg9: memref<1x32xf32, #tpu.memory_space<vmem>>, %arg10: memref<1x32xf32, #tpu.memory_space<vmem>>, %arg11: memref<1x32xf32, #tpu.memory_space<vmem>>, %arg12: memref<16x32xf32, #tpu.memory_space<vmem>>) attributes {dimension_semantics = [#tpu.dimension_semantics<parallel>], iteration_bounds = array<i64: 1>, scalar_prefetch = 0 : i64, scratch_operands = 0 : i64, tpu.core_type = #tpu.core_type<tc>, window_params = [{transform_indices = @transform_0, window_bounds = array<i64: 16, 32>}, {pipeline_mode = #tpu.pipeline_mode<synchronous>, transform_indices = @transform_1, window_bounds = array<i64: 32, 96>}, {pipeline_mode = #tpu.pipeline_mode<synchronous>, transform_indices = @transform_2, window_bounds = array<i64: 32, 32>}, {pipeline_mode = #tpu.pipeline_mode<synchronous>, transform_indices = @transform_3, window_bounds = array<i64: 1, 32>}, {pipeline_mode = #tpu.pipeline_mode<synchronous>, transform_indices = @transform_4, window_bounds = array<i64: 1, 32>}, {pipeline_mode = #tpu.pipeline_mode<synchronous>, transform_indices = @transform_5, window_bounds = array<i64: 32, 64>}, {pipeline_mode = #tpu.pipeline_mode<synchronous>, transform_indices = @transform_6, window_bounds = array<i64: 1, 64>}, {pipeline_mode = #tpu.pipeline_mode<synchronous>, transform_indices = @transform_7, window_bounds = array<i64: 64, 32>}, {pipeline_mode = #tpu.pipeline_mode<synchronous>, transform_indices = @transform_8, window_bounds = array<i64: 1, 32>}, {pipeline_mode = #tpu.pipeline_mode<synchronous>, transform_indices = @transform_9, window_bounds = array<i64: 1, 32>}, {pipeline_mode = #tpu.pipeline_mode<synchronous>, transform_indices = @transform_10, window_bounds = array<i64: 1, 32>}, {transform_indices = @transform_11, window_bounds = array<i64: 16, 32>}]} {
    %c0 = arith.constant 0 : index
    %c0_0 = arith.constant 0 : index
    %0 = vector.load %arg1[%c0, %c0_0] : memref<16x32xf32, #tpu.memory_space<vmem>>, vector<16x32xf32>
    %c0_1 = arith.constant 0 : index
    %c0_2 = arith.constant 0 : index
    %1 = vector.load %arg2[%c0_1, %c0_2] : memref<32x96xf32, #tpu.memory_space<vmem>>, vector<32x96xf32>
    %cst = arith.constant dense<0.000000e+00> : vector<16x96xf32>
    %2 = tpu.matmul %0, %1, %cst {dimension_numbers = #tpu.dot_dimension_numbers<[1], [0], [0], [1], [0, 0, 1, 1], [], []>} : vector<16x32xf32>, vector<32x96xf32>, vector<16x96xf32> -> vector<16x96xf32>
    %3 = vector.extract_strided_slice %2 {offsets = [0, 0], sizes = [16, 32], strides = [1, 1]} : vector<16x96xf32> to vector<16x32xf32>
    %4 = vector.shape_cast %3 : vector<16x32xf32> to vector<2x8x32xf32>
    %5 = vector.extract_strided_slice %2 {offsets = [0, 32], sizes = [16, 32], strides = [1, 1]} : vector<16x96xf32> to vector<16x32xf32>
    %6 = vector.shape_cast %5 : vector<16x32xf32> to vector<2x8x32xf32>
    %7 = vector.extract_strided_slice %2 {offsets = [0, 64], sizes = [16, 32], strides = [1, 1]} : vector<16x96xf32> to vector<16x32xf32>
    %8 = vector.shape_cast %7 : vector<16x32xf32> to vector<2x8x32xf32>
    %c0_3 = arith.constant 0 : index
    %c0_4 = arith.constant 0 : index
    %9 = vector.load %arg3[%c0_3, %c0_4] : memref<32x32xf32, #tpu.memory_space<vmem>>, vector<32x32xf32>
    %cst_5 = arith.constant 0.000000e+00 : f32
    %10 = vector.broadcast %cst_5 : f32 to vector<16x32xf32>
    %11 = vector.extract_strided_slice %4 {offsets = [0, 0, 0], sizes = [2, 8, 8], strides = [1, 1, 1]} : vector<2x8x32xf32> to vector<2x8x8xf32>
    %12 = vector.extract_strided_slice %6 {offsets = [0, 0, 0], sizes = [2, 8, 8], strides = [1, 1, 1]} : vector<2x8x32xf32> to vector<2x8x8xf32>
    %13 = vector.extract_strided_slice %8 {offsets = [0, 0, 0], sizes = [2, 8, 8], strides = [1, 1, 1]} : vector<2x8x32xf32> to vector<2x8x8xf32>
    "tpu.trace_start"() <{level = 10 : i32, message = "bqd,bkd->bqk"}> : () -> ()
    %cst_6 = arith.constant dense<0.000000e+00> : vector<2x8x8xf32>
    %14 = tpu.matmul %11, %12, %cst_6 {dimension_numbers = #tpu.dot_dimension_numbers<[2], [2], [1], [1], [0, 0, 0, 1, 1, 1], [0], [0]>} : vector<2x8x8xf32>, vector<2x8x8xf32>, vector<2x8x8xf32> -> vector<2x8x8xf32>
    "tpu.trace_stop"() : () -> ()
    %cst_7 = arith.constant dense<0xFF800000> : vector<2x8xf32>
    %15 = vector.multi_reduction <maximumf>, %14, %cst_7 [1] : vector<2x8x8xf32> to vector<2x8xf32>
    %16 = vector.shape_cast %15 : vector<2x8xf32> to vector<2x1x8xf32>
    %17 = vector.broadcast %16 : vector<2x1x8xf32> to vector<2x8x8xf32>
    %18 = arith.subf %14, %17 : vector<2x8x8xf32>
    %19 = math.exp %18 : vector<2x8x8xf32>
    %cst_8 = arith.constant dense<0.000000e+00> : vector<2x8xf32>
    %20 = vector.multi_reduction <add>, %19, %cst_8 [1] : vector<2x8x8xf32> to vector<2x8xf32>
    %21 = vector.shape_cast %20 : vector<2x8xf32> to vector<2x1x8xf32>
    %22 = tpu.reciprocal %21 : vector<2x1x8xf32> -> vector<2x1x8xf32>
    %23 = vector.broadcast %22 : vector<2x1x8xf32> to vector<2x8x8xf32>
    %24 = arith.mulf %19, %23 : vector<2x8x8xf32>
    "tpu.trace_start"() <{level = 10 : i32, message = "bqk,bkd->bqd"}> : () -> ()
    %cst_9 = arith.constant dense<0.000000e+00> : vector<2x8x8xf32>
    %25 = tpu.matmul %24, %13, %cst_9 {dimension_numbers = #tpu.dot_dimension_numbers<[2], [1], [1], [2], [0, 0, 0, 1, 1, 2], [0], [0]>} : vector<2x8x8xf32>, vector<2x8x8xf32>, vector<2x8x8xf32> -> vector<2x8x8xf32>
    "tpu.trace_stop"() : () -> ()
    %26 = vector.shape_cast %25 : vector<2x8x8xf32> to vector<16x8xf32>
    %27 = vector.extract_strided_slice %9 {offsets = [0, 0], sizes = [8, 32], strides = [1, 1]} : vector<32x32xf32> to vector<8x32xf32>
    %cst_10 = arith.constant dense<0.000000e+00> : vector<16x32xf32>
    %28 = tpu.matmul %26, %27, %cst_10 {dimension_numbers = #tpu.dot_dimension_numbers<[1], [0], [0], [1], [0, 0, 1, 1], [], []>} : vector<16x8xf32>, vector<8x32xf32>, vector<16x32xf32> -> vector<16x32xf32>
    %29 = arith.addf %10, %28 : vector<16x32xf32>
    %30 = vector.extract_strided_slice %4 {offsets = [0, 0, 8], sizes = [2, 8, 8], strides = [1, 1, 1]} : vector<2x8x32xf32> to vector<2x8x8xf32>
    %31 = vector.extract_strided_slice %6 {offsets = [0, 0, 8], sizes = [2, 8, 8], strides = [1, 1, 1]} : vector<2x8x32xf32> to vector<2x8x8xf32>
    %32 = vector.extract_strided_slice %8 {offsets = [0, 0, 8], sizes = [2, 8, 8], strides = [1, 1, 1]} : vector<2x8x32xf32> to vector<2x8x8xf32>
    "tpu.trace_start"() <{level = 10 : i32, message = "bqd,bkd->bqk"}> : () -> ()
    %cst_11 = arith.constant dense<0.000000e+00> : vector<2x8x8xf32>
    %33 = tpu.matmul %30, %31, %cst_11 {dimension_numbers = #tpu.dot_dimension_numbers<[2], [2], [1], [1], [0, 0, 0, 1, 1, 1], [0], [0]>} : vector<2x8x8xf32>, vector<2x8x8xf32>, vector<2x8x8xf32> -> vector<2x8x8xf32>
    "tpu.trace_stop"() : () -> ()
    %cst_12 = arith.constant dense<0xFF800000> : vector<2x8xf32>
    %34 = vector.multi_reduction <maximumf>, %33, %cst_12 [1] : vector<2x8x8xf32> to vector<2x8xf32>
    %35 = vector.shape_cast %34 : vector<2x8xf32> to vector<2x1x8xf32>
    %36 = vector.broadcast %35 : vector<2x1x8xf32> to vector<2x8x8xf32>
    %37 = arith.subf %33, %36 : vector<2x8x8xf32>
    %38 = math.exp %37 : vector<2x8x8xf32>
    %cst_13 = arith.constant dense<0.000000e+00> : vector<2x8xf32>
    %39 = vector.multi_reduction <add>, %38, %cst_13 [1] : vector<2x8x8xf32> to vector<2x8xf32>
    %40 = vector.shape_cast %39 : vector<2x8xf32> to vector<2x1x8xf32>
    %41 = tpu.reciprocal %40 : vector<2x1x8xf32> -> vector<2x1x8xf32>
    %42 = vector.broadcast %41 : vector<2x1x8xf32> to vector<2x8x8xf32>
    %43 = arith.mulf %38, %42 : vector<2x8x8xf32>
    "tpu.trace_start"() <{level = 10 : i32, message = "bqk,bkd->bqd"}> : () -> ()
    %cst_14 = arith.constant dense<0.000000e+00> : vector<2x8x8xf32>
    %44 = tpu.matmul %43, %32, %cst_14 {dimension_numbers = #tpu.dot_dimension_numbers<[2], [1], [1], [2], [0, 0, 0, 1, 1, 2], [0], [0]>} : vector<2x8x8xf32>, vector<2x8x8xf32>, vector<2x8x8xf32> -> vector<2x8x8xf32>
    "tpu.trace_stop"() : () -> ()
    %45 = vector.shape_cast %44 : vector<2x8x8xf32> to vector<16x8xf32>
    %46 = vector.extract_strided_slice %9 {offsets = [8, 0], sizes = [8, 32], strides = [1, 1]} : vector<32x32xf32> to vector<8x32xf32>
    %cst_15 = arith.constant dense<0.000000e+00> : vector<16x32xf32>
    %47 = tpu.matmul %45, %46, %cst_15 {dimension_numbers = #tpu.dot_dimension_numbers<[1], [0], [0], [1], [0, 0, 1, 1], [], []>} : vector<16x8xf32>, vector<8x32xf32>, vector<16x32xf32> -> vector<16x32xf32>
    %48 = arith.addf %29, %47 : vector<16x32xf32>
    %49 = vector.extract_strided_slice %4 {offsets = [0, 0, 16], sizes = [2, 8, 8], strides = [1, 1, 1]} : vector<2x8x32xf32> to vector<2x8x8xf32>
    %50 = vector.extract_strided_slice %6 {offsets = [0, 0, 16], sizes = [2, 8, 8], strides = [1, 1, 1]} : vector<2x8x32xf32> to vector<2x8x8xf32>
    %51 = vector.extract_strided_slice %8 {offsets = [0, 0, 16], sizes = [2, 8, 8], strides = [1, 1, 1]} : vector<2x8x32xf32> to vector<2x8x8xf32>
    "tpu.trace_start"() <{level = 10 : i32, message = "bqd,bkd->bqk"}> : () -> ()
    %cst_16 = arith.constant dense<0.000000e+00> : vector<2x8x8xf32>
    %52 = tpu.matmul %49, %50, %cst_16 {dimension_numbers = #tpu.dot_dimension_numbers<[2], [2], [1], [1], [0, 0, 0, 1, 1, 1], [0], [0]>} : vector<2x8x8xf32>, vector<2x8x8xf32>, vector<2x8x8xf32> -> vector<2x8x8xf32>
    "tpu.trace_stop"() : () -> ()
    %cst_17 = arith.constant dense<0xFF800000> : vector<2x8xf32>
    %53 = vector.multi_reduction <maximumf>, %52, %cst_17 [1] : vector<2x8x8xf32> to vector<2x8xf32>
    %54 = vector.shape_cast %53 : vector<2x8xf32> to vector<2x1x8xf32>
    %55 = vector.broadcast %54 : vector<2x1x8xf32> to vector<2x8x8xf32>
    %56 = arith.subf %52, %55 : vector<2x8x8xf32>
    %57 = math.exp %56 : vector<2x8x8xf32>
    %cst_18 = arith.constant dense<0.000000e+00> : vector<2x8xf32>
    %58 = vector.multi_reduction <add>, %57, %cst_18 [1] : vector<2x8x8xf32> to vector<2x8xf32>
    %59 = vector.shape_cast %58 : vector<2x8xf32> to vector<2x1x8xf32>
    %60 = tpu.reciprocal %59 : vector<2x1x8xf32> -> vector<2x1x8xf32>
    %61 = vector.broadcast %60 : vector<2x1x8xf32> to vector<2x8x8xf32>
    %62 = arith.mulf %57, %61 : vector<2x8x8xf32>
    "tpu.trace_start"() <{level = 10 : i32, message = "bqk,bkd->bqd"}> : () -> ()
    %cst_19 = arith.constant dense<0.000000e+00> : vector<2x8x8xf32>
    %63 = tpu.matmul %62, %51, %cst_19 {dimension_numbers = #tpu.dot_dimension_numbers<[2], [1], [1], [2], [0, 0, 0, 1, 1, 2], [0], [0]>} : vector<2x8x8xf32>, vector<2x8x8xf32>, vector<2x8x8xf32> -> vector<2x8x8xf32>
    "tpu.trace_stop"() : () -> ()
    %64 = vector.shape_cast %63 : vector<2x8x8xf32> to vector<16x8xf32>
    %65 = vector.extract_strided_slice %9 {offsets = [16, 0], sizes = [8, 32], strides = [1, 1]} : vector<32x32xf32> to vector<8x32xf32>
    %cst_20 = arith.constant dense<0.000000e+00> : vector<16x32xf32>
    %66 = tpu.matmul %64, %65, %cst_20 {dimension_numbers = #tpu.dot_dimension_numbers<[1], [0], [0], [1], [0, 0, 1, 1], [], []>} : vector<16x8xf32>, vector<8x32xf32>, vector<16x32xf32> -> vector<16x32xf32>
    %67 = arith.addf %48, %66 : vector<16x32xf32>
    %68 = vector.extract_strided_slice %4 {offsets = [0, 0, 24], sizes = [2, 8, 8], strides = [1, 1, 1]} : vector<2x8x32xf32> to vector<2x8x8xf32>
    %69 = vector.extract_strided_slice %6 {offsets = [0, 0, 24], sizes = [2, 8, 8], strides = [1, 1, 1]} : vector<2x8x32xf32> to vector<2x8x8xf32>
    %70 = vector.extract_strided_slice %8 {offsets = [0, 0, 24], sizes = [2, 8, 8], strides = [1, 1, 1]} : vector<2x8x32xf32> to vector<2x8x8xf32>
    "tpu.trace_start"() <{level = 10 : i32, message = "bqd,bkd->bqk"}> : () -> ()
    %cst_21 = arith.constant dense<0.000000e+00> : vector<2x8x8xf32>
    %71 = tpu.matmul %68, %69, %cst_21 {dimension_numbers = #tpu.dot_dimension_numbers<[2], [2], [1], [1], [0, 0, 0, 1, 1, 1], [0], [0]>} : vector<2x8x8xf32>, vector<2x8x8xf32>, vector<2x8x8xf32> -> vector<2x8x8xf32>
    "tpu.trace_stop"() : () -> ()
    %cst_22 = arith.constant dense<0xFF800000> : vector<2x8xf32>
    %72 = vector.multi_reduction <maximumf>, %71, %cst_22 [1] : vector<2x8x8xf32> to vector<2x8xf32>
    %73 = vector.shape_cast %72 : vector<2x8xf32> to vector<2x1x8xf32>
    %74 = vector.broadcast %73 : vector<2x1x8xf32> to vector<2x8x8xf32>
    %75 = arith.subf %71, %74 : vector<2x8x8xf32>
    %76 = math.exp %75 : vector<2x8x8xf32>
    %cst_23 = arith.constant dense<0.000000e+00> : vector<2x8xf32>
    %77 = vector.multi_reduction <add>, %76, %cst_23 [1] : vector<2x8x8xf32> to vector<2x8xf32>
    %78 = vector.shape_cast %77 : vector<2x8xf32> to vector<2x1x8xf32>
    %79 = tpu.reciprocal %78 : vector<2x1x8xf32> -> vector<2x1x8xf32>
    %80 = vector.broadcast %79 : vector<2x1x8xf32> to vector<2x8x8xf32>
    %81 = arith.mulf %76, %80 : vector<2x8x8xf32>
    "tpu.trace_start"() <{level = 10 : i32, message = "bqk,bkd->bqd"}> : () -> ()
    %cst_24 = arith.constant dense<0.000000e+00> : vector<2x8x8xf32>
    %82 = tpu.matmul %81, %70, %cst_24 {dimension_numbers = #tpu.dot_dimension_numbers<[2], [1], [1], [2], [0, 0, 0, 1, 1, 2], [0], [0]>} : vector<2x8x8xf32>, vector<2x8x8xf32>, vector<2x8x8xf32> -> vector<2x8x8xf32>
    "tpu.trace_stop"() : () -> ()
    %83 = vector.shape_cast %82 : vector<2x8x8xf32> to vector<16x8xf32>
    %84 = vector.extract_strided_slice %9 {offsets = [24, 0], sizes = [8, 32], strides = [1, 1]} : vector<32x32xf32> to vector<8x32xf32>
    %cst_25 = arith.constant dense<0.000000e+00> : vector<16x32xf32>
    %85 = tpu.matmul %83, %84, %cst_25 {dimension_numbers = #tpu.dot_dimension_numbers<[1], [0], [0], [1], [0, 0, 1, 1], [], []>} : vector<16x8xf32>, vector<8x32xf32>, vector<16x32xf32> -> vector<16x32xf32>
    %86 = arith.addf %67, %85 : vector<16x32xf32>
    %87 = arith.addf %0, %86 : vector<16x32xf32>
    %cst_26 = arith.constant dense<0.000000e+00> : vector<16xf32>
    %88 = vector.multi_reduction <add>, %87, %cst_26 [1] : vector<16x32xf32> to vector<16xf32>
    %89 = vector.shape_cast %88 : vector<16xf32> to vector<16x1xf32>
    %cst_27 = arith.constant 3.200000e+01 : f32
    %90 = vector.broadcast %cst_27 : f32 to vector<16x1xf32>
    %91 = arith.divf %89, %90 : vector<16x1xf32>
    %92 = vector.broadcast %91 : vector<16x1xf32> to vector<16x32xf32>
    %93 = arith.subf %87, %92 : vector<16x32xf32>
    %94 = arith.mulf %93, %93 : vector<16x32xf32>
    %cst_28 = arith.constant dense<0.000000e+00> : vector<16xf32>
    %95 = vector.multi_reduction <add>, %94, %cst_28 [1] : vector<16x32xf32> to vector<16xf32>
    %96 = vector.shape_cast %95 : vector<16xf32> to vector<16x1xf32>
    %cst_29 = arith.constant 3.200000e+01 : f32
    %97 = vector.broadcast %cst_29 : f32 to vector<16x1xf32>
    %98 = arith.divf %96, %97 : vector<16x1xf32>
    %99 = vector.broadcast %91 : vector<16x1xf32> to vector<16x32xf32>
    %100 = arith.subf %87, %99 : vector<16x32xf32>
    %cst_30 = arith.constant 9.99999974E-6 : f32
    %101 = vector.broadcast %cst_30 : f32 to vector<16x1xf32>
    %102 = arith.addf %98, %101 : vector<16x1xf32>
    %103 = math.rsqrt %102 : vector<16x1xf32>
    %104 = vector.broadcast %103 : vector<16x1xf32> to vector<16x32xf32>
    %105 = arith.mulf %100, %104 : vector<16x32xf32>
    %c0_31 = arith.constant 0 : index
    %c0_32 = arith.constant 0 : index
    %106 = vector.load %arg4[%c0_31, %c0_32] : memref<1x32xf32, #tpu.memory_space<vmem>>, vector<1x32xf32>
    %107 = vector.broadcast %106 : vector<1x32xf32> to vector<16x32xf32>
    %108 = arith.mulf %105, %107 : vector<16x32xf32>
    %c0_33 = arith.constant 0 : index
    %c0_34 = arith.constant 0 : index
    %109 = vector.load %arg5[%c0_33, %c0_34] : memref<1x32xf32, #tpu.memory_space<vmem>>, vector<1x32xf32>
    %110 = vector.broadcast %109 : vector<1x32xf32> to vector<16x32xf32>
    %111 = arith.addf %108, %110 : vector<16x32xf32>
    %c0_35 = arith.constant 0 : index
    %c0_36 = arith.constant 0 : index
    %112 = vector.load %arg6[%c0_35, %c0_36] : memref<32x64xf32, #tpu.memory_space<vmem>>, vector<32x64xf32>
    %cst_37 = arith.constant dense<0.000000e+00> : vector<16x64xf32>
    %113 = tpu.matmul %111, %112, %cst_37 {dimension_numbers = #tpu.dot_dimension_numbers<[1], [0], [0], [1], [0, 0, 1, 1], [], []>} : vector<16x32xf32>, vector<32x64xf32>, vector<16x64xf32> -> vector<16x64xf32>
    %c0_38 = arith.constant 0 : index
    %c0_39 = arith.constant 0 : index
    %114 = vector.load %arg7[%c0_38, %c0_39] : memref<1x64xf32, #tpu.memory_space<vmem>>, vector<1x64xf32>
    %115 = vector.broadcast %114 : vector<1x64xf32> to vector<16x64xf32>
    %116 = arith.addf %113, %115 : vector<16x64xf32>
    %cst_40 = arith.constant 0.000000e+00 : f32
    %117 = vector.broadcast %cst_40 : f32 to vector<16x64xf32>
    %118 = arith.maximumf %116, %117 : vector<16x64xf32>
    %c0_41 = arith.constant 0 : index
    %c0_42 = arith.constant 0 : index
    %119 = vector.load %arg8[%c0_41, %c0_42] : memref<64x32xf32, #tpu.memory_space<vmem>>, vector<64x32xf32>
    %cst_43 = arith.constant dense<0.000000e+00> : vector<16x32xf32>
    %120 = tpu.matmul %118, %119, %cst_43 {dimension_numbers = #tpu.dot_dimension_numbers<[1], [0], [0], [1], [0, 0, 1, 1], [], []>} : vector<16x64xf32>, vector<64x32xf32>, vector<16x32xf32> -> vector<16x32xf32>
    %c0_44 = arith.constant 0 : index
    %c0_45 = arith.constant 0 : index
    %121 = vector.load %arg9[%c0_44, %c0_45] : memref<1x32xf32, #tpu.memory_space<vmem>>, vector<1x32xf32>
    %122 = vector.broadcast %121 : vector<1x32xf32> to vector<16x32xf32>
    %123 = arith.addf %120, %122 : vector<16x32xf32>
    %124 = arith.addf %111, %123 : vector<16x32xf32>
    %cst_46 = arith.constant dense<0.000000e+00> : vector<16xf32>
    %125 = vector.multi_reduction <add>, %124, %cst_46 [1] : vector<16x32xf32> to vector<16xf32>
    %126 = vector.shape_cast %125 : vector<16xf32> to vector<16x1xf32>
    %cst_47 = arith.constant 3.200000e+01 : f32
    %127 = vector.broadcast %cst_47 : f32 to vector<16x1xf32>
    %128 = arith.divf %126, %127 : vector<16x1xf32>
    %129 = vector.broadcast %128 : vector<16x1xf32> to vector<16x32xf32>
    %130 = arith.subf %124, %129 : vector<16x32xf32>
    %131 = arith.mulf %130, %130 : vector<16x32xf32>
    %cst_48 = arith.constant dense<0.000000e+00> : vector<16xf32>
    %132 = vector.multi_reduction <add>, %131, %cst_48 [1] : vector<16x32xf32> to vector<16xf32>
    %133 = vector.shape_cast %132 : vector<16xf32> to vector<16x1xf32>
    %cst_49 = arith.constant 3.200000e+01 : f32
    %134 = vector.broadcast %cst_49 : f32 to vector<16x1xf32>
    %135 = arith.divf %133, %134 : vector<16x1xf32>
    %136 = vector.broadcast %128 : vector<16x1xf32> to vector<16x32xf32>
    %137 = arith.subf %124, %136 : vector<16x32xf32>
    %cst_50 = arith.constant 9.99999974E-6 : f32
    %138 = vector.broadcast %cst_50 : f32 to vector<16x1xf32>
    %139 = arith.addf %135, %138 : vector<16x1xf32>
    %140 = math.rsqrt %139 : vector<16x1xf32>
    %141 = vector.broadcast %140 : vector<16x1xf32> to vector<16x32xf32>
    %142 = arith.mulf %137, %141 : vector<16x32xf32>
    %c0_51 = arith.constant 0 : index
    %c0_52 = arith.constant 0 : index
    %143 = vector.load %arg10[%c0_51, %c0_52] : memref<1x32xf32, #tpu.memory_space<vmem>>, vector<1x32xf32>
    %144 = vector.broadcast %143 : vector<1x32xf32> to vector<16x32xf32>
    %145 = arith.mulf %142, %144 : vector<16x32xf32>
    %c0_53 = arith.constant 0 : index
    %c0_54 = arith.constant 0 : index
    %146 = vector.load %arg11[%c0_53, %c0_54] : memref<1x32xf32, #tpu.memory_space<vmem>>, vector<1x32xf32>
    %147 = vector.broadcast %146 : vector<1x32xf32> to vector<16x32xf32>
    %148 = arith.addf %145, %147 : vector<16x32xf32>
    %c0_55 = arith.constant 0 : index
    %c0_56 = arith.constant 0 : index
    %149 = vector.load %arg12[%c0_55, %c0_56] : memref<16x32xf32, #tpu.memory_space<vmem>>, vector<16x32xf32>
    tpu.vector_store %arg12[%c0_55, %c0_56], %148 {strides = array<i32>} : memref<16x32xf32, #tpu.memory_space<vmem>>, vector<16x32xf32>,
    return
  }
  func.func @transform_0(%arg0: i32) -> (i32, i32) {
    %c0_i32 = arith.constant 0 : i32
    %c0_i32_0 = arith.constant 0 : i32
    return %arg0, %c0_i32 : i32, i32
  }
  func.func @transform_1(%arg0: i32) -> (i32, i32) {
    %c0_i32 = arith.constant 0 : i32
    %c0_i32_0 = arith.constant 0 : i32
    %c0_i32_1 = arith.constant 0 : i32
    return %c0_i32, %c0_i32_0 : i32, i32
  }
  func.func @transform_2(%arg0: i32) -> (i32, i32) {
    %c0_i32 = arith.constant 0 : i32
    %c0_i32_0 = arith.constant 0 : i32
    %c0_i32_1 = arith.constant 0 : i32
    return %c0_i32, %c0_i32_0 : i32, i32
  }
  func.func @transform_3(%arg0: i32) -> (i32, i32) {
    %c0_i32 = arith.constant 0 : i32
    %c0_i32_0 = arith.constant 0 : i32
    %c0_i32_1 = arith.constant 0 : i32
    return %c0_i32, %c0_i32_0 : i32, i32
  }
  func.func @transform_4(%arg0: i32) -> (i32, i32) {
    %c0_i32 = arith.constant 0 : i32
    %c0_i32_0 = arith.constant 0 : i32
    %c0_i32_1 = arith.constant 0 : i32
    return %c0_i32, %c0_i32_0 : i32, i32
  }
  func.func @transform_5(%arg0: i32) -> (i32, i32) {
    %c0_i32 = arith.constant 0 : i32
    %c0_i32_0 = arith.constant 0 : i32
    %c0_i32_1 = arith.constant 0 : i32
    return %c0_i32, %c0_i32_0 : i32, i32
  }
  func.func @transform_6(%arg0: i32) -> (i32, i32) {
    %c0_i32 = arith.constant 0 : i32
    %c0_i32_0 = arith.constant 0 : i32
    %c0_i32_1 = arith.constant 0 : i32
    return %c0_i32, %c0_i32_0 : i32, i32
  }
  func.func @transform_7(%arg0: i32) -> (i32, i32) {
    %c0_i32 = arith.constant 0 : i32
    %c0_i32_0 = arith.constant 0 : i32
    %c0_i32_1 = arith.constant 0 : i32
    return %c0_i32, %c0_i32_0 : i32, i32
  }
  func.func @transform_8(%arg0: i32) -> (i32, i32) {
    %c0_i32 = arith.constant 0 : i32
    %c0_i32_0 = arith.constant 0 : i32
    %c0_i32_1 = arith.constant 0 : i32
    return %c0_i32, %c0_i32_0 : i32, i32
  }
  func.func @transform_9(%arg0: i32) -> (i32, i32) {
    %c0_i32 = arith.constant 0 : i32
    %c0_i32_0 = arith.constant 0 : i32
    %c0_i32_1 = arith.constant 0 : i32
    return %c0_i32, %c0_i32_0 : i32, i32
  }
  func.func @transform_10(%arg0: i32) -> (i32, i32) {
    %c0_i32 = arith.constant 0 : i32
    %c0_i32_0 = arith.constant 0 : i32
    %c0_i32_1 = arith.constant 0 : i32
    return %c0_i32, %c0_i32_0 : i32, i32
  }
  func.func @transform_11(%arg0: i32) -> (i32, i32) {
    %c0_i32 = arith.constant 0 : i32
    %c0_i32_0 = arith.constant 0 : i32
    return %arg0, %c0_i32 : i32, i32
  }
}

</mosaic_0001>

<bundles_post_ra>
// kernel: tpu_custom_call.1
= control target key start
LH: loop header
LB: loop body
LE: loop exit
PB: predicated region body
PF: predicated region fallthrough
CT: control target
= control target key end

     0   :  { %16 = vsyncpa [#allocation3], 0  ;;  %s2871_s0 = inlined_call_operand.hbm [shape: f32[16,32], index: 0, kind: input, shape index: {}]   ;;  %s2872_s1 = inlined_call_operand.vmem [shape: f32[32,96], index: 1, kind: input, shape index: {}]   ;;  %s2873_s2 = inlined_call_operand.vmem [shape: f32[32,32], index: 2, kind: input, shape index: {}]   ;;  %s2874_s3 = inlined_call_operand.vmem [shape: f32[1,32], index: 3, kind: input, shape index: {}]   ;;  %s2875_s4 = inlined_call_operand.vmem [shape: f32[1,32], index: 4, kind: input, shape index: {}]   ;;  %s2876_s5 = inlined_call_operand.vmem [shape: f32[32,64], index: 5, kind: input, shape index: {}]   ;;  %s2877_s6 = inlined_call_operand.vmem [shape: f32[1,64], index: 6, kind: input, shape index: {}]   ;;  %s2878_s7 = inlined_call_operand.vmem [shape: f32[64,32], index: 7, kind: input, shape index: {}]   ;;  %s2879_s8 = inlined_call_operand.vmem [shape: f32[1,32], index: 8, kind: input, shape index: {}]   ;;  %s2880_s9 = inlined_call_operand.vmem [shape: f32[1,32], index: 9, kind: input, shape index: {}]   ;;  %s2881_s10 = inlined_call_operand.vmem [shape: f32[1,32], index: 10, kind: input, shape index: {}]   ;;  %s2882_s11 = inlined_call_operand.hbm [shape: f32[16,32], index: 11, kind: output, shape index: {}]  }
   0x1   :  { %17 = vsyncpa [#allocation4], 0  ;;  %s2553_s17 = smov [#allocation2]   ;;  %s2505_s21 = scalar_lea.hbm %s2871_s0, 256 }
   0x2   :  { %s23_s18 = sshll.u32 %s2553_s17, 4  ;;  %p2506_p0 = scmp.ne.s32.totalorder %s2871_s0, %s2505_s21  ;;  %s24_s18 = int_to_ptr.vmem [resolvable:$true] %s23_s18 }
   0x3   :  { %p2509_p1 = scmp.lt.u32.totalorder %s2505_s21, %s2871_s0 }
   0x5   :  { %p2511_p2 = pnand %p2509_p1, %p2506_p0 }
   0x7   :  { %2514 = shalt.err (!%p2511_p2)
}
   0x8   :  { %s2515_s26 = scalar_lea.vmem %s24_s18, 256  ;;  %p2520_p4 = scmp.lt.s32.totalorder %s24_s18, %s24_s18 }
   0x9   :  { %p2516_p3 = scmp.ne.s32.totalorder %s24_s18, %s2515_s26  ;;  %p2521_p5 = scmp.lt.s32.totalorder %s2515_s26, %s2515_s26 }
   0xb   :  { %p2522_p6 = por %p2521_p5, %p2520_p4 }
   0xd   :  { %p2523_p7 = pnand %p2522_p6, %p2516_p3 }
   0xf   :  { %2526 = shalt.err (!%p2523_p7)
}
  0x10   :  { %s2554_s27 = smov 128   ;;  %s2555_s28 = smov 8  }
  0x11   :  { %29 = dma.hbm_to_vmem [thread:$0]  %s2871_s0, 256, %s24_s18, [#allocation3], %s2554_s27, %s2554_s27, %s2555_s28  }
  0x12   :  { %2549 = dma.done.wait [#allocation3], 256  }
  0x13   :  { %2550 = vsyncadd [#allocation3], 4294967040  ;;  %vm59_vm0 = vcmask 261120   ;;  %v55_v0 = vld [vmem:[%s2872_s1] sm:$0xff]  ;;  %v56_v1 = vld [vmem:[%s2872_s1 + $0x8] sm:$0xff]  ;;  %v2556_v8 = vmov 0.0  }
  0x14   :  { %v57_v2 = vld [vmem:[%s2872_s1 + $0x10] sm:$0xff]  ;;  %v2410_v3 = vpack.c.bf16 %v56_v1, %v55_v0  ;;  %v58_v4 = vld [vmem:[%s2872_s1 + $0x18] sm:$0xff]  ;;  %v2657_v5 = vld [vmem:[#allocation2] sm:$0xff]  ;;  %2290 = vmatprep.subr.mxu0 %v2556_v8  ;;  %vm2557_vm1 = vmmov 0   ;;  %s2558_s0 = smov 64   ;;  %s2559_s1 = smov 96  }
  0x15   :  { %v2414_v6 = vpack.c.bf16 %v58_v4, %v57_v2  ;;  %2277 = vmatprep.mubr.msk.f32.mxu1 %vm59_vm0, %v2657_v5  ;;  %v2661_v7 = vld [vmem:[#allocation2 + $0x8] sm:$0xff]  ;;  %2292 = vmatprep.mubr.msk.f32.mxu0 %vm2557_vm1, %v2556_v8  ;;  %s2560_s18 = smov 88   ;;  %s2561_s21 = smov 120   ;;  %vm148_vm2 = vcmask 64512   ;;  %vm2012_vm3 = vcmask 523264  }
  0x16   :  { %2411 = vmatprep.subr.bf16.mxu1 %v2410_v3  ;;  %s2562_s22 = smov 80   ;;  %s2563_s23 = smov 56  }
  0x17   :  { %2413 = vmatpush3.bf16.msra.mxu1 %v2410_v3  ;;  %s2564_s24 = smov 112   ;;  %s2565_s25 = smov 48  }
  0x18   :  { %2415 = vmatprep.subr.bf16.mxu1 %v2414_v6  ;;  %s2566_s26 = smov 72   ;;  %s2567_s29 = smov 104  }
  0x19   :  { %s2568_s30 = smov 40  }
  0x1b   :  { %2417 = vmatpush3.bf16.msra.mxu1 %v2414_v6 }
  0x1c   :  { %2280 = vmatprep.subr.mxu1 %v2556_v8 }
  0x1e   :  { %2278 = vmatmul.mubr.msk.f32.vlgmr.msra.gmra.mrb[0].mxu1 %vm59_vm0, %v2661_v7 }
  0x1f   :  { %2282 = vmatprep.mubr.msk.f32.mxu1 %vm2557_vm1, %v2556_v8 }
  0xf1   :  { %v2279_v9 = vpop.f32.mrb[0].mxu1 }
  0xf2   :  { %414 = vrot.lane.b32.xlu1 %v2279_v9, %s2558_s0  ;;  %v132_v10 = vpop.f32.mrb[1].mxu1 }
  0xf3   :  { %146 = vrot.lane.b32.xlu0 %v132_v10, %s2559_s1 }
  0xf6   :  { %570 = vrot.lane.b32.xlu1 %v2279_v9, %s2560_s18 }
  0xf7   :  { %224 = vrot.lane.b32.xlu0 %v2279_v9, %s2559_s1 }
  0xfa   :  { %338 = vrot.lane.b32.xlu1 %v132_v10, %s2558_s0 }
  0xfb   :  { %568 = vrot.lane.b32.xlu0 %v2279_v9, %s2561_s21 }
  0xfe   :  { %490 = vrot.lane.b32.xlu1 %v132_v10, %s2561_s21 }
  0xff   :  { %492 = vrot.lane.b32.xlu0 %v132_v10, %s2560_s18 }
 0x102   :  { %1000 = vrot.lane.b32.xlu1 %v132_v10, %s2562_s22 }
 0x103   :  { %760 = vrot.lane.b32.xlu0 %v2279_v9, %s2563_s23 }
 0x106   :  { %1078 = vrot.lane.b32.xlu1 %v2279_v9, %s2562_s22 }
 0x107   :  { %998 = vrot.lane.b32.xlu0 %v132_v10, %s2564_s24 }
 0x10a   :  { %684 = vrot.lane.b32.xlu1 %v132_v10, %s2563_s23 }
 0x10b   :  { %1076 = vrot.lane.b32.xlu0 %v2279_v9, %s2564_s24 }
 0x10e   :  { %1268 = vrot.lane.b32.xlu1 %v2279_v9, %s2565_s25 }
 0x10f   :  { %1192 = vrot.lane.b32.xlu0 %v132_v10, %s2565_s25 }
 0x112   :  { %1507 = vrot.lane.b32.xlu1 %v2279_v9, %s2566_s26 }
 0x113   :  { %1429 = vrot.lane.b32.xlu0 %v132_v10, %s2566_s26 }
 0x116   :  { %1505 = vrot.lane.b32.xlu1 %v2279_v9, %s2567_s29 }
 0x117   :  { %1427 = vrot.lane.b32.xlu0 %v132_v10, %s2567_s29  ;;  %s2569_s29 = smov [#allocation5]  }
 0x11a   :  { %1697 = vrot.lane.b32.xlu1 %v2279_v9, %s2568_s30 }
 0x11b   :  { %1621 = vrot.lane.b32.xlu0 %v132_v10, %s2568_s30  ;;  %s2147_s30 = sshll.u32 %s2569_s29, 4  ;;  %s2148_s30 = int_to_ptr.vmem [resolvable:$true] %s2147_s30 }
 0x11c   :  { %s2527_s12 = scalar_lea.vmem %s2148_s30, 256  ;;  %p2532_p9 = scmp.lt.s32.totalorder %s2148_s30, %s2148_s30 }
 0x11d   :  { %p2528_p8 = scmp.ne.s32.totalorder %s2148_s30, %s2527_s12  ;;  %p2533_p10 = scmp.lt.s32.totalorder %s2527_s12, %s2527_s12 }
 0x11f   :  { %p2534_p11 = por %p2533_p10, %p2532_p9 }
 0x121   :  { %p2535_p12 = pnand %p2534_p11, %p2528_p8 }
 0x164   :  { %v415_v11 = vpop.permute.xlu1 %414 }
 0x165   :  { %v147_v12 = vpop.permute.xlu0 %146 }
 0x166   :  { %2281 = vmatpush3.xpose.msk.msra.mxu1 %vm148_vm2, %v147_v12 }
 0x167   :  { %2285 = vmatprep.subr.mxu1 %v2556_v8 }
 0x168   :  { %v2673_v13 = vpop.permute.xlu1 %570 }
 0x169   :  { %2283 = vmatmul.mubr.msk.f32.vlgmr.msra.gmra.mrb[2].mxu1 %vm148_vm2, %v132_v10  ;;  %v225_v14 = vpop.permute.xlu0 %224 }
 0x16a   :  { %2286 = vmatpush3.xpose.msk.msra.mxu1 %vm148_vm2, %v225_v14  ;;  %2287 = vmatprep.mubr.msk.f32.mxu1 %vm2557_vm1, %v2556_v8 }
 0x16b   :  { %2295 = vmatprep.subr.mxu1 %v2556_v8 }
 0x16c   :  { %v339_v15 = vpop.permute.xlu1 %338 }
 0x16d   :  { %2288 = vmatmul.mubr.msk.f32.vlgmr.msra.gmra.mrb[4].mxu1 %vm148_vm2, %v2279_v9  ;;  %2291 = vmatpush3.msra.mxu0 %v339_v15  ;;  %v569_v56 = vpop.permute.xlu0 %568 }
 0x16e   :  { %2296 = vmatpush3.msra.mxu1 %v415_v11  ;;  %2300 = vmatprep.subr.mxu0 %v2556_v8 }
 0x16f   :  { %2297 = vmatprep.mubr.msk.f32.mxu1 %vm2557_vm1, %v2556_v8  ;;  %2305 = vmatprep.subr.mxu1 %v2556_v8 }
 0x170   :  { %v491_v52 = vpop.permute.xlu1 %490 }
 0x171   :  { %v493_v60 = vpop.permute.xlu0 %492 }
 0x174   :  { %v2689_v55 = vpop.permute.xlu1 %1000 }
 0x175   :  { %v761_v0 = vpop.permute.xlu0 %760 }
 0x178   :  { %v2691_v58 = vpop.permute.xlu1 %1078 }
 0x17c   :  { %v685_v63 = vpop.permute.xlu1 %684 }
 0x23c   :  { %v219_v16 = vpop.f32.mrb[2].mxu1 }
 0x23d   :  { %v300_v17 = vsel %vm148_vm2, %v219_v16, -inf  ;;  %v2284_v18 = vpop.f32.mrb[3].mxu1 }
 0x23e   :  { %v301_v19 = vrot.slane %v300_v17, 4 }
 0x240   :  { %v302_v20 = vmax.f32 %v300_v17, %v301_v19  ;;  %v296_v21 = vpop.f32.mrb[4].mxu1 }
 0x241   :  { %v307_v22 = vsel %vm148_vm2, %v296_v21, -inf  ;;  %v2289_v23 = vpop.f32.mrb[5].mxu1 }
 0x242   :  { %v303_v24 = vrot.slane %v302_v20, 2  ;;  %v308_v25 = vrot.slane %v307_v22, 4 }
 0x244   :  { %v304_v26 = vmax.f32 %v302_v20, %v303_v24  ;;  %v309_v27 = vmax.f32 %v307_v22, %v308_v25 }
 0x246   :  { %v305_v28 = vrot.slane %v304_v26, 1  ;;  %v310_v29 = vrot.slane %v309_v27, 2 }
 0x248   :  { %v306_v30 = vmax.f32 %v304_v26, %v305_v28  ;;  %v311_v31 = vmax.f32 %v309_v27, %v310_v29 }
 0x24a   :  { %v314_v32 = vsub.f32 %v219_v16, %v306_v30  ;;  %v312_v33 = vrot.slane %v311_v31, 1 }
 0x24c   :  { %v316_v34 = vmul.f32 1.442695, %v314_v32  ;;  %v313_v35 = vmax.f32 %v311_v31, %v312_v33 }
 0x24e   :  { %2465 = vpow2.f32 %v316_v34  ;;  %v315_v36 = vsub.f32 %v296_v21, %v313_v35 }
 0x250   :  { %v318_v37 = vmul.f32 1.442695, %v315_v36 }
 0x252   :  { %2467 = vpow2.f32 %v318_v37 }
 0x258   :  { %v2466_v38 = vpop.eup %2465 }
 0x259   :  { %v320_v39 = vsel %vm148_vm2, %v2466_v38, 0.0 }
 0x25a   :  { %v321_v40 = vrot.slane %v320_v39, 4 }
 0x25c   :  { %v2468_v41 = vpop.eup %2467  ;;  %v322_v42 = vadd.f32 %v321_v40, %v320_v39 }
 0x25d   :  { %v327_v43 = vsel %vm148_vm2, %v2468_v41, 0.0 }
 0x25e   :  { %v323_v44 = vrot.slane %v322_v42, 2  ;;  %v328_v45 = vrot.slane %v327_v43, 4 }
 0x260   :  { %v324_v46 = vadd.f32 %v323_v44, %v322_v42  ;;  %v329_v47 = vadd.f32 %v328_v45, %v327_v43 }
 0x262   :  { %v325_v48 = vrot.slane %v324_v46, 1  ;;  %v330_v49 = vrot.slane %v329_v47, 2 }
 0x264   :  { %v326_v50 = vadd.f32 %v325_v48, %v324_v46  ;;  %v331_v51 = vadd.f32 %v330_v49, %v329_v47 }
 0x266   :  { %v332_v53 = vrot.slane %v331_v51, 1  ;;  %2469 = vrcp.f32 %v326_v50  ;;  %v999_v50 = vpop.permute.xlu0 %998 }
 0x268   :  { %v333_v54 = vadd.f32 %v332_v53, %v331_v51  ;;  %v142_v53 = vld [vmem:[%s2873_s2 + $0x8] sm:$0xff] }
 0x26a   :  { %2471 = vrcp.f32 %v333_v54  ;;  %v1077_v51 = vpop.permute.xlu0 %1076  ;;  %v141_v54 = vld [vmem:[%s2873_s2] sm:$0xff] }
 0x270   :  { %v2470_v57 = vpop.eup %2469 }
 0x271   :  { %v336_v59 = vmul.f32 %v2470_v57, %v2466_v38 }
 0x273   :  { %2293 = vmatmul.mubr.msk.f32.vlgmr.msra.gmra.mrb[0].mxu0 %vm148_vm2, %v336_v59 }
 0x274   :  { %v2472_v61 = vpop.eup %2471  ;;  %2301 = vmatpush3.xpose.msk.msra.mxu0 %vm148_vm2, %v493_v60  ;;  %2302 = vmatprep.mubr.msk.f32.mxu0 %vm2557_vm1, %v2556_v8 }
 0x275   :  { %2310 = vmatprep.subr.mxu0 %v2556_v8  ;;  %v337_v62 = vmul.f32 %v2472_v61, %v2468_v41 }
 0x277   :  { %2298 = vmatmul.mubr.msk.f32.vlgmr.msra.gmra.mrb[6].mxu1 %vm148_vm2, %v337_v62  ;;  %2303 = vmatmul.mubr.msk.f32.vlgmr.msra.gmra.mrb[2].mxu0 %vm148_vm2, %v491_v52  ;;  %v1269_v52 = vpop.permute.xlu1 %1268 }
 0x278   :  { %2306 = vmatpush3.xpose.msk.msra.mxu1 %vm148_vm2, %v2673_v13  ;;  %2311 = vmatpush3.msra.mxu0 %v685_v63 }
 0x279   :  { %2307 = vmatprep.mubr.msk.f32.mxu1 %vm2557_vm1, %v2556_v8  ;;  %2315 = vmatprep.subr.mxu1 %v2556_v8 }
 0x27a   :  { %2312 = vmatprep.mubr.msk.f32.mxu0 %vm2557_vm1, %v2556_v8  ;;  %2320 = vmatprep.subr.mxu0 %v142_v53 }
 0x27b   :  { %2308 = vmatmul.mubr.msk.f32.vlgmr.msra.gmra.mrb[8].mxu1 %vm148_vm2, %v569_v56 }
 0x27c   :  { %2316 = vmatpush3.msra.mxu1 %v761_v0  ;;  %2317 = vmatprep.mubr.msk.f32.mxu1 %vm2557_vm1, %v2556_v8 }
 0x27d   :  { %2330 = vmatprep.subr.mxu1 %v2556_v8 }
 0x346   :  { %v2711_v1 = vpop.f32.mrb[0].mxu0 }
 0x347   :  { %v2294_v2 = vpop.f32.mrb[1].mxu0 }
 0x348   :  { %v143_v2 = vld [vmem:[%s2873_s2 + $0x10] sm:$0xff] }
 0x34a   :  { %v2713_v3 = vpop.f32.mrb[6].mxu1  ;;  %v564_v4 = vpop.f32.mrb[2].mxu0 }
 0x34b   :  { %v646_v6 = vsel %vm148_vm2, %v564_v4, -inf  ;;  %v2299_v9 = vpop.f32.mrb[7].mxu1  ;;  %v2304_v10 = vpop.f32.mrb[3].mxu0 }
 0x34c   :  { %v647_v11 = vrot.slane %v646_v6, 4 }
 0x34e   :  { %v648_v12 = vmax.f32 %v646_v6, %v647_v11  ;;  %v642_v13 = vpop.f32.mrb[8].mxu1 }
 0x34f   :  { %v653_v14 = vsel %vm148_vm2, %v642_v13, -inf  ;;  %v2309_v15 = vpop.f32.mrb[9].mxu1 }
 0x350   :  { %v649_v16 = vrot.slane %v648_v12, 2  ;;  %v654_v17 = vrot.slane %v653_v14, 4 }
 0x352   :  { %v650_v18 = vmax.f32 %v648_v12, %v649_v16  ;;  %v655_v19 = vmax.f32 %v653_v14, %v654_v17 }
 0x354   :  { %v651_v20 = vrot.slane %v650_v18, 1  ;;  %v656_v21 = vrot.slane %v655_v19, 2 }
 0x356   :  { %v652_v22 = vmax.f32 %v650_v18, %v651_v20  ;;  %v657_v23 = vmax.f32 %v655_v19, %v656_v21 }
 0x358   :  { %v660_v24 = vsub.f32 %v564_v4, %v652_v22  ;;  %v658_v25 = vrot.slane %v657_v23, 1  ;;  %v1193_v4 = vpop.permute.xlu0 %1192 }
 0x35a   :  { %v662_v26 = vmul.f32 1.442695, %v660_v24  ;;  %v659_v27 = vmax.f32 %v657_v23, %v658_v25 }
 0x35c   :  { %2473 = vpow2.f32 %v662_v26  ;;  %v661_v28 = vsub.f32 %v642_v13, %v659_v27 }
 0x35e   :  { %v664_v29 = vmul.f32 1.442695, %v661_v28 }
 0x360   :  { %2475 = vpow2.f32 %v664_v29 }
 0x366   :  { %v2474_v30 = vpop.eup %2473 }
 0x367   :  { %v666_v31 = vsel %vm148_vm2, %v2474_v30, 0.0 }
 0x368   :  { %v667_v32 = vrot.slane %v666_v31, 4 }
 0x36a   :  { %v2476_v33 = vpop.eup %2475  ;;  %v668_v34 = vadd.f32 %v667_v32, %v666_v31 }
 0x36b   :  { %v673_v35 = vsel %vm148_vm2, %v2476_v33, 0.0 }
 0x36c   :  { %v669_v36 = vrot.slane %v668_v34, 2  ;;  %v674_v37 = vrot.slane %v673_v35, 4 }
 0x36e   :  { %v670_v38 = vadd.f32 %v669_v36, %v668_v34  ;;  %v675_v39 = vadd.f32 %v674_v37, %v673_v35 }
 0x370   :  { %v671_v40 = vrot.slane %v670_v38, 1  ;;  %v676_v41 = vrot.slane %v675_v39, 2 }
 0x372   :  { %v672_v42 = vadd.f32 %v671_v40, %v670_v38  ;;  %v677_v43 = vadd.f32 %v676_v41, %v675_v39  ;;  %v1430_v38 = vpop.permute.xlu0 %1429 }
 0x374   :  { %2477 = vrcp.f32 %v672_v42  ;;  %v678_v44 = vrot.slane %v677_v43, 1 }
 0x376   :  { %v679_v45 = vadd.f32 %v678_v44, %v677_v43  ;;  %v1428_v42 = vpop.permute.xlu0 %1427 }
 0x378   :  { %2479 = vrcp.f32 %v679_v45  ;;  %v1508_v45 = vpop.permute.xlu1 %1507 }
 0x37a   :  { %v1622_v44 = vpop.permute.xlu0 %1621 }
 0x37e   :  { %v2478_v46 = vpop.eup %2477 }
 0x37f   :  { %v682_v47 = vmul.f32 %v2478_v46, %v2474_v30 }
 0x381   :  { %2313 = vmatmul.mubr.msk.f32.vlgmr.msra.gmra.mrb[4].mxu0 %vm148_vm2, %v682_v47 }
 0x382   :  { %v2480_v48 = vpop.eup %2479  ;;  %2321 = vmatpush3.msra.mxu0 %v142_v53 }
 0x383   :  { %v683_v49 = vmul.f32 %v2480_v48, %v2476_v33  ;;  %2325 = vmatprep.subr.mxu0 %v141_v54  ;;  %v1506_v48 = vpop.permute.xlu1 %1505 }
 0x385   :  { %2318 = vmatmul.mubr.msk.f32.vlgmr.msra.gmra.mrb[10].mxu1 %vm148_vm2, %v683_v49 }
 0x386   :  { %2331 = vmatpush3.xpose.msk.msra.mxu1 %vm148_vm2, %v2689_v55  ;;  %2332 = vmatprep.mubr.msk.f32.mxu1 %vm2557_vm1, %v2556_v8 }
 0x387   :  { %2335 = vmatprep.subr.mxu1 %v2556_v8 }
 0x389   :  { %2333 = vmatmul.mubr.msk.f32.vlgmr.msra.gmra.mrb[12].mxu1 %vm148_vm2, %v999_v50 }
 0x38a   :  { %2336 = vmatpush3.xpose.msk.msra.mxu1 %vm148_vm2, %v2691_v58  ;;  %2337 = vmatprep.mubr.msk.f32.mxu1 %vm2557_vm1, %v2556_v8 }
 0x38b   :  { %2345 = vmatprep.subr.mxu1 %v2556_v8 }
 0x38d   :  { %2338 = vmatmul.mubr.msk.f32.vlgmr.msra.gmra.mrb[14].mxu1 %vm148_vm2, %v1077_v51 }
 0x38e   :  { %2346 = vmatpush3.msra.mxu1 %v1269_v52  ;;  %2347 = vmatprep.mubr.msk.f32.mxu1 %vm2557_vm1, %v2556_v8  ;;  %v1698_v52 = vpop.permute.xlu1 %1697 }
 0x38f   :  { %2355 = vmatprep.subr.mxu1 %v2556_v8 }
 0x454   :  { %v756_v55 = vpop.f32.mrb[4].mxu0 }
 0x455   :  { %v2314_v56 = vpop.f32.mrb[5].mxu0  ;;  %2322 = vmatprep.mubr.msk.f32.mxu0 %vm148_vm2, %v756_v55 }
 0x458   :  { %v832_v57 = vpop.f32.mrb[10].mxu1 }
 0x459   :  { %v2319_v58 = vpop.f32.mrb[11].mxu1  ;;  %2323 = vmatmul.mubr.msk.f32.vlgmr.msra.gmra.mrb[6].mxu0 %vm148_vm2, %v832_v57 }
 0x45a   :  { %2327 = vmatprep.mubr.msk.f32.mxu0 %vm148_vm2, %v2711_v1  ;;  %2326 = vmatpush3.msra.mxu0 %v141_v54 }
 0x45b   :  { %2340 = vmatprep.subr.mxu0 %v2556_v8 }
 0x45c   :  { %v1072_v59 = vpop.f32.mrb[12].mxu1 }
 0x45d   :  { %v1154_v60 = vsel %vm148_vm2, %v1072_v59, -inf  ;;  %v2334_v61 = vpop.f32.mrb[13].mxu1 }
 0x45e   :  { %v1155_v62 = vrot.slane %v1154_v60, 4 }
 0x460   :  { %v1156_v63 = vmax.f32 %v1154_v60, %v1155_v62  ;;  %v1150_v0 = vpop.f32.mrb[14].mxu1 }
 0x461   :  { %v1161_v6 = vsel %vm148_vm2, %v1150_v0, -inf  ;;  %2328 = vmatmul.mubr.msk.f32.vlgmr.msra.gmra.mrb[6].mxu0 %vm148_vm2, %v2713_v3  ;;  %v2339_v1 = vpop.f32.mrb[15].mxu1 }
 0x462   :  { %v1157_v9 = vrot.slane %v1156_v63, 2  ;;  %v1162_v10 = vrot.slane %v1161_v6, 4  ;;  %2341 = vmatpush3.msra.mxu0 %v1193_v4  ;;  %2342 = vmatprep.mubr.msk.f32.mxu0 %vm2557_vm1, %v2556_v8 }
 0x463   :  { %2350 = vmatprep.subr.mxu0 %v143_v2 }
 0x464   :  { %v1158_v11 = vmax.f32 %v1156_v63, %v1157_v9  ;;  %v1163_v12 = vmax.f32 %v1161_v6, %v1162_v10 }
 0x466   :  { %v1159_v13 = vrot.slane %v1158_v11, 1  ;;  %v1164_v14 = vrot.slane %v1163_v12, 2 }
 0x468   :  { %v1160_v15 = vmax.f32 %v1158_v11, %v1159_v13  ;;  %v1165_v16 = vmax.f32 %v1163_v12, %v1164_v14  ;;  %v144_v12 = vld [vmem:[%s2873_s2 + $0x18] sm:$0xff] }
 0x46a   :  { %v1168_v17 = vsub.f32 %v1072_v59, %v1160_v15  ;;  %v1166_v18 = vrot.slane %v1165_v16, 1 }
 0x46c   :  { %v1170_v19 = vmul.f32 1.442695, %v1168_v17  ;;  %v1167_v20 = vmax.f32 %v1165_v16, %v1166_v18 }
 0x46e   :  { %2481 = vpow2.f32 %v1170_v19  ;;  %v1169_v3 = vsub.f32 %v1150_v0, %v1167_v20 }
 0x470   :  { %v1172_v21 = vmul.f32 1.442695, %v1169_v3 }
 0x472   :  { %2483 = vpow2.f32 %v1172_v21 }
 0x478   :  { %v2482_v22 = vpop.eup %2481 }
 0x479   :  { %v1174_v23 = vsel %vm148_vm2, %v2482_v22, 0.0 }
 0x47a   :  { %v1175_v24 = vrot.slane %v1174_v23, 4 }
 0x47c   :  { %v2484_v25 = vpop.eup %2483  ;;  %v1176_v26 = vadd.f32 %v1175_v24, %v1174_v23 }
 0x47d   :  { %v1181_v27 = vsel %vm148_vm2, %v2484_v25, 0.0 }
 0x47e   :  { %v1177_v28 = vrot.slane %v1176_v26, 2  ;;  %v1182_v29 = vrot.slane %v1181_v27, 4 }
 0x480   :  { %v1178_v30 = vadd.f32 %v1177_v28, %v1176_v26  ;;  %v1183_v31 = vadd.f32 %v1182_v29, %v1181_v27 }
 0x482   :  { %v1179_v32 = vrot.slane %v1178_v30, 1  ;;  %v1184_v33 = vrot.slane %v1183_v31, 2 }
 0x484   :  { %v1180_v34 = vadd.f32 %v1179_v32, %v1178_v30  ;;  %v1185_v35 = vadd.f32 %v1184_v33, %v1183_v31 }
 0x486   :  { %2485 = vrcp.f32 %v1180_v34  ;;  %v1186_v36 = vrot.slane %v1185_v35, 1 }
 0x488   :  { %v1187_v37 = vadd.f32 %v1186_v36, %v1185_v35 }
 0x48a   :  { %2487 = vrcp.f32 %v1187_v37 }
 0x490   :  { %v2486_v39 = vpop.eup %2485 }
 0x491   :  { %v1190_v40 = vmul.f32 %v2486_v39, %v2482_v22 }
 0x493   :  { %2343 = vmatmul.mubr.msk.f32.vlgmr.msra.gmra.mrb[8].mxu0 %vm148_vm2, %v1190_v40 }
 0x494   :  { %v2488_v41 = vpop.eup %2487  ;;  %2351 = vmatpush3.msra.mxu0 %v143_v2 }
 0x495   :  { %v1191_v43 = vmul.f32 %v2488_v41, %v2484_v25  ;;  %2360 = vmatprep.subr.mxu0 %v2556_v8 }
 0x497   :  { %2348 = vmatmul.mubr.msk.f32.vlgmr.msra.gmra.mrb[16].mxu1 %vm148_vm2, %v1191_v43 }
 0x498   :  { %2356 = vmatpush3.xpose.msk.msra.mxu1 %vm148_vm2, %v1430_v38  ;;  %2357 = vmatprep.mubr.msk.f32.mxu1 %vm2557_vm1, %v2556_v8 }
 0x499   :  { %2365 = vmatprep.subr.mxu1 %v2556_v8 }
 0x49b   :  { %2358 = vmatmul.mubr.msk.f32.vlgmr.msra.gmra.mrb[18].mxu1 %vm148_vm2, %v1428_v42 }
 0x49c   :  { %2366 = vmatpush3.msra.mxu1 %v1622_v44  ;;  %2367 = vmatprep.mubr.msk.f32.mxu1 %vm2557_vm1, %v2556_v8 }
 0x566   :  { %v1264_v46 = vpop.f32.mrb[8].mxu0 }
 0x567   :  { %v2344_v47 = vpop.f32.mrb[9].mxu0  ;;  %2352 = vmatprep.mubr.msk.f32.mxu0 %vm148_vm2, %v1264_v46 }
 0x56a   :  { %v1340_v49 = vpop.f32.mrb[16].mxu1 }
 0x56b   :  { %v2349_v50 = vpop.f32.mrb[17].mxu1  ;;  %2353 = vmatmul.mubr.msk.f32.vlgmr.msra.gmra.mrb[6].mxu0 %vm148_vm2, %v1340_v49 }
 0x56c   :  { %2361 = vmatpush3.xpose.msk.msra.mxu0 %vm148_vm2, %v1508_v45  ;;  %2362 = vmatprep.mubr.msk.f32.mxu0 %vm2557_vm1, %v2556_v8 }
 0x56d   :  { %2370 = vmatprep.subr.mxu0 %v2556_v8 }
 0x56e   :  { %v1501_v51 = vpop.f32.mrb[18].mxu1 }
 0x56f   :  { %v1583_v53 = vsel %vm148_vm2, %v1501_v51, -inf  ;;  %v2359_v54 = vpop.f32.mrb[19].mxu1  ;;  %2363 = vmatmul.mubr.msk.f32.vlgmr.msra.gmra.mrb[10].mxu0 %vm148_vm2, %v1506_v48 }
 0x570   :  { %v1584_v55 = vrot.slane %v1583_v53, 4  ;;  %2371 = vmatpush3.msra.mxu0 %v1698_v52  ;;  %2372 = vmatprep.mubr.msk.f32.mxu0 %vm2557_vm1, %v2556_v8  ;;  %v1904_v52 = vld [vmem:[%s2876_s5 + $0x8] sm:$0xff]  ;;  %v1905_v54 = vld [vmem:[%s2876_s5 + $0x10] sm:$0xff] }
 0x571   :  { %2375 = vmatprep.subr.mxu0 %v144_v12 }
 0x572   :  { %v1585_v56 = vmax.f32 %v1583_v53, %v1584_v55  ;;  %v1906_v55 = vld [vmem:[%s2876_s5 + $0x18] sm:$0xff] }
 0x574   :  { %v1586_v57 = vrot.slane %v1585_v56, 2 }
 0x576   :  { %v1587_v58 = vmax.f32 %v1585_v56, %v1586_v57  ;;  %v2422_v56 = vpack.c.bf16 %v1906_v55, %v1905_v54  ;;  %v1997_v57 = vld [vmem:[%s2878_s7] sm:$0xff] }
 0x577   :  { %v2201_v54 = vld [vmem:[%s2880_s9] ss:$0 sm:$0xff] }
 0x578   :  { %v1588_v59 = vrot.slane %v1587_v58, 1 }
 0x57a   :  { %v1589_v60 = vmax.f32 %v1587_v58, %v1588_v59  ;;  %v1998_v58 = vld [vmem:[%s2878_s7 + $0x8] sm:$0xff]  ;;  %v1999_v59 = vld [vmem:[%s2878_s7 + $0x10] sm:$0xff] }
 0x57c   :  { %v1597_v61 = vsub.f32 %v1501_v51, %v1589_v60  ;;  %v2426_v60 = vpack.c.bf16 %v1998_v58, %v1997_v57  ;;  %v2202_v58 = vld [vmem:[%s2881_s10] ss:$0 sm:$0xff] }
 0x57e   :  { %v1599_v62 = vmul.f32 1.442695, %v1597_v61  ;;  %v2000_v61 = vld [vmem:[%s2878_s7 + $0x18] sm:$0xff] }
 0x580   :  { %2489 = vpow2.f32 %v1599_v62  ;;  %v2430_v62 = vpack.c.bf16 %v2000_v61, %v1999_v59 }
 0x58a   :  { %v2490_v63 = vpop.eup %2489 }
 0x58b   :  { %v1603_v0 = vsel %vm148_vm2, %v2490_v63, 0.0 }
 0x58c   :  { %v1604_v2 = vrot.slane %v1603_v0, 4 }
 0x58e   :  { %v1605_v4 = vadd.f32 %v1604_v2, %v1603_v0  ;;  %v2002_v0 = vld [vmem:[%s2878_s7 + $0x28] sm:$0xff] }
 0x590   :  { %v1606_v6 = vrot.slane %v1605_v4, 2 }
 0x592   :  { %v1607_v1 = vadd.f32 %v1606_v6, %v1605_v4 }
 0x594   :  { %v1608_v9 = vrot.slane %v1607_v1, 1 }
 0x596   :  { %v1609_v10 = vadd.f32 %v1608_v9, %v1607_v1 }
 0x598   :  { %2491 = vrcp.f32 %v1609_v10 }
 0x5a2   :  { %v2492_v11 = vpop.eup %2491 }
 0x5a3   :  { %v1619_v8 = vmul.f32 %v2492_v11, %v2490_v63  ;;  %v2001_v63 = vld [vmem:[%s2878_s7 + $0x20] sm:$0xff] }
 0x5a4   :  { %v2434_v2 = vpack.c.bf16 %v2002_v0, %v2001_v63 }
 0x5a5   :  { %2368 = vmatmul.mubr.msk.f32.vlgmr.msra.gmra.mrb[20].mxu1 %vm148_vm2, %v1619_v8 }
 0x642   :  { %v1579_v13 = vpop.f32.mrb[10].mxu0 }
 0x643   :  { %v1590_v14 = vsel %vm148_vm2, %v1579_v13, -inf  ;;  %v2364_v15 = vpop.f32.mrb[11].mxu0 }
 0x644   :  { %v1591_v16 = vrot.slane %v1590_v14, 4 }
 0x646   :  { %v1592_v17 = vmax.f32 %v1590_v14, %v1591_v16  ;;  %v2194_v14 = vld [vmem:[%s2875_s4] ss:$0 sm:$0xff] }
 0x648   :  { %v1593_v18 = vrot.slane %v1592_v17, 2 }
 0x64a   :  { %v1594_v19 = vmax.f32 %v1592_v17, %v1593_v18 }
 0x64c   :  { %v1595_v20 = vrot.slane %v1594_v19, 1 }
 0x64e   :  { %v1596_v3 = vmax.f32 %v1594_v19, %v1595_v20 }
 0x650   :  { %v1598_v21 = vsub.f32 %v1579_v13, %v1596_v3  ;;  %v2003_v3 = vld [vmem:[%s2878_s7 + $0x30] sm:$0xff] }
 0x652   :  { %v1601_v22 = vmul.f32 1.442695, %v1598_v21  ;;  %v2004_v21 = vld [vmem:[%s2878_s7 + $0x38] sm:$0xff] }
 0x654   :  { %2493 = vpow2.f32 %v1601_v22  ;;  %v2438_v22 = vpack.c.bf16 %v2004_v21, %v2003_v3 }
 0x65e   :  { %v2494_v23 = vpop.eup %2493 }
 0x65f   :  { %v1610_v24 = vsel %vm148_vm2, %v2494_v23, 0.0 }
 0x660   :  { %v1611_v25 = vrot.slane %v1610_v24, 4 }
 0x662   :  { %v1612_v26 = vadd.f32 %v1611_v25, %v1610_v24 }
 0x664   :  { %v1613_v27 = vrot.slane %v1612_v26, 2 }
 0x666   :  { %v1614_v28 = vadd.f32 %v1613_v27, %v1612_v26 }
 0x668   :  { %v1615_v29 = vrot.slane %v1614_v28, 1 }
 0x66a   :  { %v1616_v30 = vadd.f32 %v1615_v29, %v1614_v28 }
 0x66c   :  { %2495 = vrcp.f32 %v1616_v30  ;;  %v2198_v30 = vld [vmem:[%s2879_s8] ss:$0 sm:$0xff] }
 0x676   :  { %v2496_v31 = vpop.eup %2495 }
 0x677   :  { %v1620_v32 = vmul.f32 %v2496_v31, %v2494_v23  ;;  %v2195_v23 = vld [vmem:[%s2877_s6] ss:$0 sm:$0xff] }
 0x678   :  { %v1693_v33 = vpop.f32.mrb[20].mxu1 }
 0x679   :  { %v2369_v34 = vpop.f32.mrb[21].mxu1  ;;  %2373 = vmatmul.mubr.msk.f32.vlgmr.msra.gmra.mrb[12].mxu0 %vm148_vm2, %v1620_v32 }
 0x67a   :  { %2377 = vmatprep.mubr.msk.f32.mxu0 %vm148_vm2, %v1693_v33  ;;  %2376 = vmatpush3.msra.mxu0 %v144_v12  ;;  %v2193_v12 = vld [vmem:[%s2874_s3] ss:$0 sm:$0xff] }
 0x67b   :  { %2427 = vmatprep.subr.bf16.mxu0 %v2426_v60 }
 0x74c   :  { %v1769_v35 = vpop.f32.mrb[12].mxu0 }
 0x74d   :  { %v2374_v36 = vpop.f32.mrb[13].mxu0  ;;  %2378 = vmatmul.mubr.msk.f32.vlgmr.msra.gmra.mrb[6].mxu0 %vm148_vm2, %v1769_v35 }
 0x74e   :  { %2429 = vmatpush3.bf16.msra.mxu0 %v2426_v60 }
 0x74f   :  { %2431 = vmatprep.subr.bf16.mxu0 %v2430_v62 }
 0x752   :  { %2433 = vmatpush3.bf16.msra.mxu0 %v2430_v62 }
 0x753   :  { %2435 = vmatprep.subr.bf16.mxu0 %v2434_v2 }
 0x756   :  { %2437 = vmatpush3.bf16.msra.mxu0 %v2434_v2 }
 0x757   :  { %2439 = vmatprep.subr.bf16.mxu0 %v2438_v22 }
 0x75a   :  { %2441 = vmatpush3.bf16.msra.mxu0 %v2438_v22 }
 0x820   :  { %v2379_v37 = vpop.f32.mrb[6].mxu0 }
 0x821   :  { %v1857_v38 = vadd.f32 %v2379_v37, %v2661_v7  ;;  %v1845_v39 = vpop.f32.mrb[7].mxu0 }
 0x822   :  { %v1856_v40 = vadd.f32 %v1845_v39, %v2657_v5  ;;  %v1903_v5 = vld [vmem:[%s2876_s5] sm:$0xff] }
 0x823   :  { %v1861_v41 = vsel %vm59_vm0, %v1857_v38, 0.0  ;;  %v2418_v53 = vpack.c.bf16 %v1904_v52, %v1903_v5 }
 0x824   :  { %1862 = vadd.xlane.f32.xlu1 %v1861_v41  ;;  %v1858_v42 = vsel %vm59_vm0, %v1856_v40, 0.0 }
 0x825   :  { %1859 = vadd.xlane.f32.xlu0 %v1858_v42  ;;  %2419 = vmatprep.subr.bf16.mxu1 %v2418_v53 }
 0x826   :  { %2421 = vmatpush3.bf16.msra.mxu1 %v2418_v53 }
 0x827   :  { %2423 = vmatprep.subr.bf16.mxu1 %v2422_v56 }
 0x82a   :  { %2425 = vmatpush3.bf16.msra.mxu1 %v2422_v56 }
 0x8b1   :  { %v1863_v43 = vpop.xlane.xlu1 %1862 }
 0x8b2   :  { %v1866_v44 = vmul.f32 0.03125, %v1863_v43  ;;  %v1860_v45 = vpop.xlane.xlu0 %1859 }
 0x8b3   :  { %v1865_v46 = vmul.f32 0.03125, %v1860_v45 }
 0x8b4   :  { %v1868_v47 = vsub.f32 %v1857_v38, %v1866_v44 }
 0x8b5   :  { %v1867_v48 = vsub.f32 %v1856_v40, %v1865_v46 }
 0x8b6   :  { %v1870_v51 = vmul.f32 %v1868_v47, %v1868_v47 }
 0x8b7   :  { %v1869_v49 = vmul.f32 %v1867_v48, %v1867_v48 }
 0x8b8   :  { %v1874_v7 = vsel %vm59_vm0, %v1870_v51, 0.0 }
 0x8b9   :  { %v1871_v50 = vsel %vm59_vm0, %v1869_v49, 0.0 }
 0x8ba   :  { %1872 = vadd.xlane.f32.xlu0 %v1871_v50 }
 0x8be   :  { %1875 = vadd.xlane.f32.xlu0 %v1874_v7 }
 0x947   :  { %v1873_v4 = vpop.xlane.xlu0 %1872 }
 0x948   :  { %v1877_v6 = vmul.f32 0.03125, %v1873_v4 }
 0x94a   :  { %v1879_v1 = vadd.f32 1e-05, %v1877_v6 }
 0x94b   :  { %v1876_v9 = vpop.xlane.xlu0 %1875 }
 0x94c   :  { %2497 = vrsqrt.f32 %v1879_v1  ;;  %v1878_v10 = vmul.f32 0.03125, %v1876_v9 }
 0x94e   :  { %v1880_v11 = vadd.f32 1e-05, %v1878_v10 }
 0x950   :  { %2499 = vrsqrt.f32 %v1880_v11 }
 0x956   :  { %v2498_v8 = vpop.eup %2497 }
 0x957   :  { %v1883_v13 = vmul.f32 %v2498_v8, %v1867_v48 }
 0x959   :  { %v1892_v15 = vmul.f32 %v2193_v12, %v1883_v13 }
 0x95a   :  { %v2500_v16 = vpop.eup %2499 }
 0x95b   :  { %v1884_v17 = vmul.f32 %v2500_v16, %v1868_v47  ;;  %v1901_v18 = vadd.f32 %v2194_v14, %v1892_v15 }
 0x95d   :  { %v1893_v19 = vmul.f32 %v2193_v12, %v1884_v17  ;;  %2388 = vmatprep.mubr.msk.f32.mxu1 %vm59_vm0, %v1901_v18 }
 0x95f   :  { %v1902_v20 = vadd.f32 %v2194_v14, %v1893_v19 }
 0x961   :  { %2389 = vmatmul.mubr.msk.f32.vlgmr.msra.gmra.mrb[22].mxu1 %vm59_vm0, %v1902_v20 }
 0xa34   :  { %v2390_v24 = vpop.f32.mrb[22].mxu1 }
 0xa35   :  { %v1992_v25 = vadd.f32 %v2390_v24, %v2195_v23  ;;  %v1986_v26 = vpop.f32.mrb[23].mxu1 }
 0xa36   :  { %v1987_v27 = vadd.f32 %v2195_v23, %v1986_v26 }
 0xa37   :  { %v1996_v29 = vmax.f32 %v1992_v25, 0.0 }
 0xa38   :  { %v1995_v28 = vmax.f32 %v1987_v27, 0.0 }
 0xa3a   :  { %2407 = vmatprep.mubr.msk.f32.mxu0 %vm2012_vm3, %v1995_v28 }
 0xa3b   :  { %2408 = vmatmul.mubr.msk.f32.vlgmr.msra.gmra.mrb[14].mxu0 %vm2012_vm3, %v1996_v29 }
 0xb0e   :  { %v2409_v31 = vpop.f32.mrb[14].mxu0 }
 0xb0f   :  { %v2091_v32 = vadd.f32 %v2409_v31, %v2198_v30  ;;  %v2085_v33 = vpop.f32.mrb[15].mxu0 }
 0xb10   :  { %v2086_v34 = vadd.f32 %v2198_v30, %v2085_v33 }
 0xb11   :  { %v2095_v35 = vadd.f32 %v2091_v32, %v1902_v20 }
 0xb12   :  { %v2094_v36 = vadd.f32 %v2086_v34, %v1901_v18 }
 0xb13   :  { %v2099_v37 = vsel %vm59_vm0, %v2095_v35, 0.0 }
 0xb14   :  { %2100 = vadd.xlane.f32.xlu0 %v2099_v37  ;;  %v2096_v38 = vsel %vm59_vm0, %v2094_v36, 0.0 }
 0xb15   :  { %2097 = vadd.xlane.f32.xlu1 %v2096_v38 }
 0xba1   :  { %v2101_v39 = vpop.xlane.xlu0 %2100 }
 0xba2   :  { %v2103_v40 = vmul.f32 0.03125, %v2101_v39  ;;  %v2098_v41 = vpop.xlane.xlu1 %2097 }
 0xba3   :  { %v2102_v42 = vmul.f32 0.03125, %v2098_v41 }
 0xba4   :  { %v2105_v43 = vsub.f32 %v2095_v35, %v2103_v40 }
 0xba5   :  { %v2104_v44 = vsub.f32 %v2094_v36, %v2102_v42 }
 0xba6   :  { %v2107_v45 = vmul.f32 %v2105_v43, %v2105_v43 }
 0xba7   :  { %v2106_v46 = vmul.f32 %v2104_v44, %v2104_v44 }
 0xba8   :  { %v2111_v47 = vsel %vm59_vm0, %v2107_v45, 0.0 }
 0xba9   :  { %2112 = vadd.xlane.f32.xlu0 %v2111_v47  ;;  %v2108_v48 = vsel %vm59_vm0, %v2106_v46, 0.0 }
 0xbaa   :  { %2109 = vadd.xlane.f32.xlu1 %v2108_v48 }
 0xc36   :  { %v2113_v49 = vpop.xlane.xlu0 %2112 }
 0xc37   :  { %v2115_v50 = vmul.f32 0.03125, %v2113_v49  ;;  %v2110_v51 = vpop.xlane.xlu1 %2109 }
 0xc38   :  { %v2114_v7 = vmul.f32 0.03125, %v2110_v51 }
 0xc39   :  { %v2117_v5 = vadd.f32 1e-05, %v2115_v50 }
 0xc3a   :  { %v2116_v52 = vadd.f32 1e-05, %v2114_v7 }
 0xc3b   :  { %2501 = vrsqrt.f32 %v2117_v5 }
 0xc3c   :  { %2503 = vrsqrt.f32 %v2116_v52 }
 0xc45   :  { %v2502_v53 = vpop.eup %2501 }
 0xc46   :  { %v2504_v55 = vpop.eup %2503  ;;  %v2121_v56 = vmul.f32 %v2502_v53, %v2105_v43 }
 0xc47   :  { %v2120_v57 = vmul.f32 %v2504_v55, %v2104_v44 }
 0xc48   :  { %v2130_v59 = vmul.f32 %v2201_v54, %v2121_v56 }
 0xc49   :  { %v2129_v60 = vmul.f32 %v2201_v54, %v2120_v57 }
 0xc4a   :  { %v2139_v61 = vadd.f32 %v2202_v58, %v2130_v59 }
 0xc4b   :  { %v2138_v62 = vadd.f32 %v2202_v58, %v2129_v60 }
 0xc4c   :  { %2141 = vst.msk [vmem:[#allocation5 + $0x8] sm:$0xff] %vm59_vm0, %v2139_v61 }
 0xc4d   :  { %2140 = vst.msk [vmem:[#allocation5] sm:$0xff] %vm59_vm0, %v2138_v62 }
 0xc4e   :  { %2538 = shalt.err (!%p2535_p12)
}
 0xc4f   :  { %s2539_s13 = scalar_lea.hbm %s2882_s11, 256 }
 0xc50   :  { %p2540_p13 = scmp.ne.s32.totalorder %s2882_s11, %s2539_s13  ;;  %p2543_p0 = scmp.lt.u32.totalorder %s2539_s13, %s2882_s11 }
 0xc52   :  { %p2545_p1 = pnand %p2543_p0, %p2540_p13 }
 0xc54   :  { %2548 = shalt.err (!%p2545_p1)
}
 0xc55   :  { %2153 = dma.vmem_to_hbm [thread:$0]  %s2148_s30, 256, %s2882_s11, [#allocation4], %s2554_s27, %s2554_s27, %s2555_s28  }
 0xc56   :  { %2551 = dma.done.wait [#allocation4], 256  }
 0xc57   :  { %2552 = vsyncadd [#allocation4], 4294967040 }
 0xc58   :  { %2157 = vsyncpa [#allocation3], 1 }
 0xc59   :  { %2158 = vsyncpa [#allocation4], 1 }

</bundles_post_ra>
